<compile_context>
chip_gen: v7x
topology: tpu7x:2x2x1
jax: 0.10.0
libtpu: 0.0.40
codegen_flags: <defaults>
</compile_context>

<pallas_src>
import functools

import jax
import jax.numpy as jnp
import numpy as np
from jax.experimental import pallas as pl
from jax.experimental.pallas import tpu as pltpu


def _attention_block_kernel(g_ref, x_ref, wg_ref, wx_ref, b_ref, wpsi_ref,
                            bpsi_ref, out_ref, *, use_mxu_psi):
    # g_ref:    (F_g, TILE)   lane-dense pixel tile of the gating signal
    # x_ref:    (F_l, TILE)   lane-dense pixel tile of the skip connection
    # wg_ref:   (F_int, F_g)  folded conv+BN weight (VMEM-resident)
    # wx_ref:   (F_int, F_l)  folded conv+BN weight (VMEM-resident)
    # b_ref:    (F_int, 1)    pre-summed folded biases (f32)
    # wpsi_ref: (1, F_int) if use_mxu_psi else (F_int, 1), folded psi weight
    # bpsi_ref: (1,) in SMEM  folded psi bias (scalar)
    # out_ref:  (F_l, TILE)
    x = x_ref[...]
    h = (jnp.dot(wg_ref[...], g_ref[...], preferred_element_type=jnp.float32)
         + jnp.dot(wx_ref[...], x, preferred_element_type=jnp.float32)
         + b_ref[...])
    h = jnp.maximum(h, 0.0)                                    # ReLU (f32)
    if use_mxu_psi:
        # Large F_int: the VPU is the saturating slot -> reduce on the MXU.
        psi_logit = jnp.dot(wpsi_ref[...], h,
                            preferred_element_type=jnp.float32) + bpsi_ref[0]
    else:
        # Small F_int: a width-1 MXU matmul is wasteful; VPU mul + sublane sum.
        psi_logit = jnp.sum(h * wpsi_ref[...], axis=0, keepdims=True) + bpsi_ref[0]
    psi = jax.nn.sigmoid(psi_logit)                            # (1, TILE) f32
    # Gate in f32 (v5e has no bf16 VPU); cast only for the store.
    out_ref[...] = (x.astype(jnp.float32) * psi).astype(out_ref.dtype)


def _fold_bn(w, b, gamma, beta, mean, var, eps=1e-5):
    """Fold eval-mode BatchNorm into a preceding 1x1 conv.

    w: (C_out, C_in), b: (C_out,).  Returns (w_eff, b_eff) so that
    BN(conv(x)) == w_eff @ x + b_eff per pixel."""
    scale = gamma / jnp.sqrt(var + eps)
    return w * scale[:, None], (b - mean) * scale + beta


def _vmem_limit_bytes():
    """Scoped-VMEM limit derived from physical VMEM (v7x: 64 MiB -> ~48 MiB,
    v5e/v6e: 128 MiB -> 96 MiB). Falls back to a proven-safe 32 MiB."""
    try:
        phys = int(pltpu.get_tpu_info().vmem_capacity_bytes)
        return min(phys * 3 // 4, 96 * 1024 * 1024)
    except Exception:
        return 32 * 1024 * 1024


def _pick_tile(HW, N, F_g, F_l, F_int, bytes_per, vmem_limit, weight_bytes):
    """Pick the lane tile (multiple of 128) and the padded pixel count."""
    hw128 = pl.cdiv(HW, 128) * 128
    # HBM bytes per lane of tile: read g (F_g) + read x (F_l) + write out (F_l).
    per_lane_hbm = bytes_per * (F_g + 2 * F_l)
    # VMEM bytes per lane: double-buffered g/x/out tiles + live f32 h intermediate.
    per_lane_vmem = 2 * bytes_per * (F_g + 2 * F_l) + 4 * F_int
    budget = max(vmem_limit - weight_bytes - (2 << 20), 128 * per_lane_vmem)
    # Target ~4 MiB of HBM traffic per grid step (amortizes ~0.35 us/step).
    tile_want = max(128, min(budget // per_lane_vmem,
                             (4 << 20) // per_lane_hbm, hw128))
    nblk = pl.cdiv(hw128, tile_want)
    # v7x has 2 TensorCores: keep >= 2 parallel grid steps when possible.
    if N * nblk < 2 and hw128 >= 256:
        nblk = 2
    tile = pl.cdiv(pl.cdiv(hw128, nblk), 128) * 128
    return tile, nblk * tile


@functools.partial(jax.jit, static_argnames=("act_dtype", "resident_weights"))
def _attention_block_impl(g, x, params, act_dtype, resident_weights):
    N, F_g, H, W = g.shape
    _, F_l, _, _ = x.shape
    HW = H * W

    wg_f, bg = _fold_bn(params["wg"], params["bg"], params["bn_g_gamma"],
                        params["bn_g_beta"], params["bn_g_mean"],
                        params["bn_g_var"])
    wx_f, bx = _fold_bn(params["wx"], params["bx"], params["bn_x_gamma"],
                        params["bn_x_beta"], params["bn_x_mean"],
                        params["bn_x_var"])
    wpsi_f, bpsi = _fold_bn(params["wpsi"], params["bpsi"],
                            params["bn_p_gamma"], params["bn_p_beta"],
                            params["bn_p_mean"], params["bn_p_var"])
    F_int = wg_f.shape[0]
    use_mxu_psi = F_int >= 128

    wg_a = wg_f.astype(act_dtype)
    wx_a = wx_f.astype(act_dtype)
    b_sum = (bg + bx).reshape(F_int, 1).astype(jnp.float32)
    wpsi_arg = (wpsi_f.reshape(1, F_int) if use_mxu_psi
                else wpsi_f.reshape(F_int, 1)).astype(jnp.float32)
    bpsi_s = bpsi.reshape(1).astype(jnp.float32)

    # Zero-copy reshape: NCHW -> (N, C, H*W); pixels go on the lane axis.
    g3 = g.reshape(N, F_g, HW).astype(act_dtype)
    x3 = x.reshape(N, F_l, HW).astype(act_dtype)

    bytes_per = np.dtype(act_dtype).itemsize
    weight_bytes = 2 * (wg_a.size * bytes_per + wx_a.size * bytes_per
                        + 4 * (b_sum.size + wpsi_arg.size))
    vmem_limit = _vmem_limit_bytes()
    tile, hw_pad = _pick_tile(HW, N, F_g, F_l, F_int, bytes_per, vmem_limit,
                              weight_bytes)

    if hw_pad != HW:
        # Pad pixels so every block is full and in-bounds -> unmasked vst.
        g3 = jnp.pad(g3, ((0, 0), (0, 0), (0, hw_pad - HW)))
        x3 = jnp.pad(x3, ((0, 0), (0, 0), (0, hw_pad - HW)))

    grid = (N, hw_pad // tile)

    if resident_weights:
        # Whole-array, VMEM-resident: fetched once, never double-buffered.
        wspec = lambda shape: pl.BlockSpec(memory_space=pltpu.MemorySpace.VMEM)
    else:
        # Fallback: blocked with a constant index map (fetched once, re-used).
        wspec = lambda shape: pl.BlockSpec(shape, lambda n, i: (0, 0))

    kernel = functools.partial(_attention_block_kernel, use_mxu_psi=use_mxu_psi)

    out3 = pl.pallas_call(
        kernel,
        out_shape=jax.ShapeDtypeStruct((N, F_l, hw_pad), act_dtype),
        grid_spec=pltpu.PrefetchScalarGridSpec(
            num_scalar_prefetch=0,
            grid=grid,
            in_specs=[
                pl.BlockSpec((None, F_g, tile), lambda n, i: (n, 0, i)),  # g
                pl.BlockSpec((None, F_l, tile), lambda n, i: (n, 0, i)),  # x
                wspec(wg_a.shape),                                        # wg
                wspec(wx_a.shape),                                        # wx
                wspec(b_sum.shape),                                       # b_sum
                wspec(wpsi_arg.shape),                                    # wpsi
                pl.BlockSpec(memory_space=pltpu.MemorySpace.SMEM),        # bpsi
            ],
            out_specs=pl.BlockSpec((None, F_l, tile), lambda n, i: (n, 0, i)),
        ),
        compiler_params=pltpu.CompilerParams(
            dimension_semantics=("parallel", "parallel"),
            vmem_limit_bytes=vmem_limit),
    )(g3, x3, wg_a, wx_a, b_sum, wpsi_arg, bpsi_s)

    if hw_pad != HW:
        out3 = out3[:, :, :HW]
    return out3.reshape(N, F_l, H, W)


def attention_block(g, x, params, act_dtype=jnp.float32):
    """g: (N, F_g, H, W), x: (N, F_l, H, W) -> (N, F_l, H, W) in act_dtype.

    act_dtype=jnp.bfloat16 halves HBM traffic (matmul accumulation, psi and the
    gating multiply stay in f32); result precision differs slightly from f32."""
    act_dtype = np.dtype(act_dtype)
    try:
        return _attention_block_impl(g, x, params, act_dtype, True)
    except Exception:
        # Fallback if unblocked VMEM-resident operand specs are unsupported by
        # the installed Pallas version: blocked, constant-index weight specs.
        return _attention_block_impl(g, x, params, act_dtype, False)


def _reference(g, x, params, eps=1e-5):
    """Pure-JAX reference (eval-mode BN), for correctness checking."""
    def conv_bn(inp, w, b, gamma, beta, mean, var):
        y = jnp.einsum("nchw,oc->nohw", inp, w) + b[None, :, None, None]
        s = gamma / jnp.sqrt(var + eps)
        return (y - mean[None, :, None, None]) * s[None, :, None, None] \
            + beta[None, :, None, None]

    g1 = conv_bn(g, params["wg"], params["bg"], params["bn_g_gamma"],
                 params["bn_g_beta"], params["bn_g_mean"], params["bn_g_var"])
    x1 = conv_bn(x, params["wx"], params["bx"], params["bn_x_gamma"],
                 params["bn_x_beta"], params["bn_x_mean"], params["bn_x_var"])
    h = jnp.maximum(g1 + x1, 0.0)
    p = conv_bn(h, params["wpsi"], params["bpsi"], params["bn_p_gamma"],
                params["bn_p_beta"], params["bn_p_mean"], params["bn_p_var"])
    return x * jax.nn.sigmoid(p)


def _init_params(key, F_g, F_l, F_int):
    ks = jax.random.split(key, 6)
    return {
        "wg": jax.random.normal(ks[0], (F_int, F_g), jnp.float32) * 0.2,
        "bg": jax.random.normal(ks[1], (F_int,), jnp.float32) * 0.1,
        "wx": jax.random.normal(ks[2], (F_int, F_l), jnp.float32) * 0.2,
        "bx": jax.random.normal(ks[3], (F_int,), jnp.float32) * 0.1,
        "wpsi": jax.random.normal(ks[4], (1, F_int), jnp.float32) * 0.2,
        "bpsi": jax.random.normal(ks[5], (1,), jnp.float32) * 0.1,
        # BatchNorm (eval-mode) parameters: deterministic but non-trivial.
        "bn_g_gamma": jnp.linspace(0.8, 1.2, F_int, dtype=jnp.float32),
        "bn_g_beta": jnp.linspace(-0.1, 0.1, F_int, dtype=jnp.float32),
        "bn_g_mean": jnp.linspace(-0.05, 0.05, F_int, dtype=jnp.float32),
        "bn_g_var": jnp.linspace(0.9, 1.1, F_int, dtype=jnp.float32),
        "bn_x_gamma": jnp.linspace(1.1, 0.9, F_int, dtype=jnp.float32),
        "bn_x_beta": jnp.linspace(0.05, -0.05, F_int, dtype=jnp.float32),
        "bn_x_mean": jnp.linspace(0.02, -0.02, F_int, dtype=jnp.float32),
        "bn_x_var": jnp.linspace(1.05, 0.95, F_int, dtype=jnp.float32),
        "bn_p_gamma": jnp.array([1.05], jnp.float32),
        "bn_p_beta": jnp.array([0.02], jnp.float32),
        "bn_p_mean": jnp.array([-0.01], jnp.float32),
        "bn_p_var": jnp.array([0.98], jnp.float32),
    }


if __name__ == "__main__":
    key = jax.random.PRNGKey(0)

    # Case 1: small channels (VPU psi path), lane-aligned HW, f32 activations.
    N, F_g, F_l, F_int, H, W = 2, 4, 4, 8, 16, 16
    k1, k2, k3, key = jax.random.split(key, 4)
    g = jax.random.normal(k1, (N, F_g, H, W), jnp.float32)
    x = jax.random.normal(k2, (N, F_l, H, W), jnp.float32)
    params = _init_params(k3, F_g, F_l, F_int)

    out = jax.block_until_ready(attention_block(g, x, params))
    ref = _reference(g, x, params)
    assert out.shape == (N, F_l, H, W)
    assert jnp.allclose(out, ref, atol=1e-5, rtol=1e-5), \
        float(jnp.max(jnp.abs(out - ref)))

    # bf16 activation/output path (halved HBM traffic); f32 accumulation keeps
    # the error small, but the tolerance is necessarily looser than f32.
    out_bf16 = jax.block_until_ready(
        attention_block(g, x, params, act_dtype=jnp.bfloat16))
    assert jnp.allclose(out_bf16.astype(jnp.float32), ref, atol=1e-1, rtol=1e-1), \
        float(jnp.max(jnp.abs(out_bf16.astype(jnp.float32) - ref)))

    # Case 2: large F_int (MXU psi path), non-128-aligned HW (padded tiles),
    # N=1 so the tile picker splits pixels to keep 2 parallel grid steps.
    N2, F_g2, F_l2, F_int2, H2, W2 = 1, 8, 8, 128, 24, 24
    k1, k2, k3, key = jax.random.split(key, 4)
    g2 = jax.random.normal(k1, (N2, F_g2, H2, W2), jnp.float32)
    x2 = jax.random.normal(k2, (N2, F_l2, H2, W2), jnp.float32)
    params2 = _init_params(k3, F_g2, F_l2, F_int2)

    out2 = jax.block_until_ready(attention_block(g2, x2, params2))
    ref2 = _reference(g2, x2, params2)
    assert out2.shape == (N2, F_l2, H2, W2)
    assert jnp.allclose(out2, ref2, atol=1e-3, rtol=1e-3), \
        float(jnp.max(jnp.abs(out2 - ref2)))

    print("KERNEL_OK")
</pallas_src>

<mosaic_0001>
module attributes {stable_mosaic.version = 11 : i64} {
  func.func @_attention_block_kernel(%arg0: i32, %arg1: i32, %arg2: memref<1x4x256xf32, #tpu.memory_space<vmem>>, %arg3: memref<1x4x256xf32, #tpu.memory_space<vmem>>, %arg4: memref<8x4xf32, #tpu.memory_space<vmem>>, %arg5: memref<8x4xf32, #tpu.memory_space<vmem>>, %arg6: memref<8x1xf32, #tpu.memory_space<vmem>>, %arg7: memref<8x1xf32, #tpu.memory_space<vmem>>, %arg8: memref<1xf32, #tpu.memory_space<smem>>, %arg9: memref<1x4x256xf32, #tpu.memory_space<vmem>>) attributes {dimension_semantics = [#tpu.dimension_semantics<parallel>, #tpu.dimension_semantics<parallel>], iteration_bounds = array<i64: 2, 1>, scalar_prefetch = 0 : i64, scratch_operands = 0 : i64, tpu.core_type = #tpu.core_type<tc>, window_params = [{transform_indices = @transform_0, window_bounds = array<i64: 1, 4, 256>}, {transform_indices = @transform_1, window_bounds = array<i64: 1, 4, 256>}, {pipeline_mode = #tpu.pipeline_mode<synchronous>, transform_indices = @transform_2, window_bounds = array<i64: 8, 4>}, {pipeline_mode = #tpu.pipeline_mode<synchronous>, transform_indices = @transform_3, window_bounds = array<i64: 8, 4>}, {pipeline_mode = #tpu.pipeline_mode<synchronous>, transform_indices = @transform_4, window_bounds = array<i64: 8, 1>}, {pipeline_mode = #tpu.pipeline_mode<synchronous>, transform_indices = @transform_5, window_bounds = array<i64: 8, 1>}, {transform_indices = @transform_6, window_bounds = array<i64: 1>}, {transform_indices = @transform_7, window_bounds = array<i64: 1, 4, 256>}]} {
    %c0 = arith.constant 0 : index
    %c0_0 = arith.constant 0 : index
    %c0_1 = arith.constant 0 : index
    %0 = vector.load %arg3[%c0, %c0_0, %c0_1] : memref<1x4x256xf32, #tpu.memory_space<vmem>>, vector<1x4x256xf32>
    %1 = vector.shape_cast %0 : vector<1x4x256xf32> to vector<4x256xf32>
    %c0_2 = arith.constant 0 : index
    %c0_3 = arith.constant 0 : index
    %2 = vector.load %arg4[%c0_2, %c0_3] : memref<8x4xf32, #tpu.memory_space<vmem>>, vector<8x4xf32>
    %c0_4 = arith.constant 0 : index
    %c0_5 = arith.constant 0 : index
    %c0_6 = arith.constant 0 : index
    %3 = vector.load %arg2[%c0_4, %c0_5, %c0_6] : memref<1x4x256xf32, #tpu.memory_space<vmem>>, vector<1x4x256xf32>
    %4 = vector.shape_cast %3 : vector<1x4x256xf32> to vector<4x256xf32>
    %cst = arith.constant dense<0.000000e+00> : vector<8x256xf32>
    %5 = tpu.matmul %2, %4, %cst {dimension_numbers = #tpu.dot_dimension_numbers<[1], [0], [0], [1], [0, 0, 1, 1], [], []>} : vector<8x4xf32>, vector<4x256xf32>, vector<8x256xf32> -> vector<8x256xf32>
    %c0_7 = arith.constant 0 : index
    %c0_8 = arith.constant 0 : index
    %6 = vector.load %arg5[%c0_7, %c0_8] : memref<8x4xf32, #tpu.memory_space<vmem>>, vector<8x4xf32>
    %cst_9 = arith.constant dense<0.000000e+00> : vector<8x256xf32>
    %7 = tpu.matmul %6, %1, %cst_9 {dimension_numbers = #tpu.dot_dimension_numbers<[1], [0], [0], [1], [0, 0, 1, 1], [], []>} : vector<8x4xf32>, vector<4x256xf32>, vector<8x256xf32> -> vector<8x256xf32>
    %8 = arith.addf %5, %7 : vector<8x256xf32>
    %c0_10 = arith.constant 0 : index
    %c0_11 = arith.constant 0 : index
    %9 = vector.load %arg6[%c0_10, %c0_11] : memref<8x1xf32, #tpu.memory_space<vmem>>, vector<8x1xf32>
    %10 = vector.broadcast %9 : vector<8x1xf32> to vector<8x256xf32>
    %11 = arith.addf %8, %10 : vector<8x256xf32>
    %cst_12 = arith.constant 0.000000e+00 : f32
    %12 = vector.broadcast %cst_12 : f32 to vector<8x256xf32>
    %13 = arith.maximumf %11, %12 : vector<8x256xf32>
    %c0_13 = arith.constant 0 : index
    %c0_14 = arith.constant 0 : index
    %14 = vector.load %arg7[%c0_13, %c0_14] : memref<8x1xf32, #tpu.memory_space<vmem>>, vector<8x1xf32>
    %15 = vector.broadcast %14 : vector<8x1xf32> to vector<8x256xf32>
    %16 = arith.mulf %13, %15 : vector<8x256xf32>
    %cst_15 = arith.constant dense<0.000000e+00> : vector<256xf32>
    %17 = vector.multi_reduction <add>, %16, %cst_15 [0] : vector<8x256xf32> to vector<256xf32>
    %18 = vector.shape_cast %17 : vector<256xf32> to vector<1x256xf32>
    %c0_16 = arith.constant 0 : index
    %19 = memref.load %arg8[%c0_16] : memref<1xf32, #tpu.memory_space<smem>>
    %20 = vector.broadcast %19 : f32 to vector<1x256xf32>
    %21 = arith.addf %18, %20 : vector<1x256xf32>
    %22 = arith.negf %21 : vector<1x256xf32>
    %23 = math.exp %22 : vector<1x256xf32>
    %cst_17 = arith.constant 1.000000e+00 : f32
    %24 = vector.broadcast %cst_17 : f32 to vector<1x256xf32>
    %25 = arith.addf %24, %23 : vector<1x256xf32>
    %26 = arith.divf %24, %25 : vector<1x256xf32>
    %27 = vector.broadcast %26 : vector<1x256xf32> to vector<4x256xf32>
    %28 = arith.mulf %1, %27 : vector<4x256xf32>
    %c0_18 = arith.constant 0 : index
    %c0_19 = arith.constant 0 : index
    %c0_20 = arith.constant 0 : index
    %29 = vector.load %arg9[%c0_18, %c0_19, %c0_20] : memref<1x4x256xf32, #tpu.memory_space<vmem>>, vector<1x4x256xf32>
    %30 = vector.shape_cast %29 : vector<1x4x256xf32> to vector<4x256xf32>
    %31 = vector.shape_cast %28 : vector<4x256xf32> to vector<1x4x256xf32>
    tpu.vector_store %arg9[%c0_18, %c0_19, %c0_20], %31 {strides = array<i32>} : memref<1x4x256xf32, #tpu.memory_space<vmem>>, vector<1x4x256xf32>,
    return
  }
  func.func @transform_0(%arg0: i32, %arg1: i32) -> (i32, i32, i32) {
    %c0_i32 = arith.constant 0 : i32
    %c0_i32_0 = arith.constant 0 : i32
    return %arg0, %c0_i32, %arg1 : i32, i32, i32
  }
  func.func @transform_1(%arg0: i32, %arg1: i32) -> (i32, i32, i32) {
    %c0_i32 = arith.constant 0 : i32
    %c0_i32_0 = arith.constant 0 : i32
    return %arg0, %c0_i32, %arg1 : i32, i32, i32
  }
  func.func @transform_2(%arg0: i32, %arg1: i32) -> (i32, i32) {
    %c0_i32 = arith.constant 0 : i32
    %c0_i32_0 = arith.constant 0 : i32
    %c0_i32_1 = arith.constant 0 : i32
    return %c0_i32, %c0_i32_0 : i32, i32
  }
  func.func @transform_3(%arg0: i32, %arg1: i32) -> (i32, i32) {
    %c0_i32 = arith.constant 0 : i32
    %c0_i32_0 = arith.constant 0 : i32
    %c0_i32_1 = arith.constant 0 : i32
    return %c0_i32, %c0_i32_0 : i32, i32
  }
  func.func @transform_4(%arg0: i32, %arg1: i32) -> (i32, i32) {
    %c0_i32 = arith.constant 0 : i32
    %c0_i32_0 = arith.constant 0 : i32
    %c0_i32_1 = arith.constant 0 : i32
    return %c0_i32, %c0_i32_0 : i32, i32
  }
  func.func @transform_5(%arg0: i32, %arg1: i32) -> (i32, i32) {
    %c0_i32 = arith.constant 0 : i32
    %c0_i32_0 = arith.constant 0 : i32
    %c0_i32_1 = arith.constant 0 : i32
    return %c0_i32, %c0_i32_0 : i32, i32
  }
  func.func @transform_6(%arg0: i32, %arg1: i32) -> i32 {
    %c0_i32 = arith.constant 0 : i32
    %c0_i32_0 = arith.constant 0 : i32
    return %c0_i32 : i32
  }
  func.func @transform_7(%arg0: i32, %arg1: i32) -> (i32, i32, i32) {
    %c0_i32 = arith.constant 0 : i32
    %c0_i32_0 = arith.constant 0 : i32
    return %arg0, %c0_i32, %arg1 : i32, i32, i32
  }
}

module attributes {stable_mosaic.version = 11 : i64} {
  func.func @_attention_block_kernel(%arg0: i32, %arg1: i32, %arg2: memref<1x4x256xf32, #tpu.memory_space<vmem>>, %arg3: memref<1x4x256xf32, #tpu.memory_space<vmem>>, %arg4: memref<8x4xf32, #tpu.memory_space<vmem>>, %arg5: memref<8x4xf32, #tpu.memory_space<vmem>>, %arg6: memref<8x1xf32, #tpu.memory_space<vmem>>, %arg7: memref<8x1xf32, #tpu.memory_space<vmem>>, %arg8: memref<1xf32, #tpu.memory_space<smem>>, %arg9: memref<1x4x256xf32, #tpu.memory_space<vmem>>) attributes {dimension_semantics = [#tpu.dimension_semantics<parallel>, #tpu.dimension_semantics<parallel>], iteration_bounds = array<i64: 2, 1>, scalar_prefetch = 0 : i64, scratch_operands = 0 : i64, tpu.core_type = #tpu.core_type<tc>, window_params = [{transform_indices = @transform_0, window_bounds = array<i64: 1, 4, 256>}, {transform_indices = @transform_1, window_bounds = array<i64: 1, 4, 256>}, {pipeline_mode = #tpu.pipeline_mode<synchronous>, transform_indices = @transform_2, window_bounds = array<i64: 8, 4>}, {pipeline_mode = #tpu.pipeline_mode<synchronous>, transform_indices = @transform_3, window_bounds = array<i64: 8, 4>}, {pipeline_mode = #tpu.pipeline_mode<synchronous>, transform_indices = @transform_4, window_bounds = array<i64: 8, 1>}, {pipeline_mode = #tpu.pipeline_mode<synchronous>, transform_indices = @transform_5, window_bounds = array<i64: 8, 1>}, {transform_indices = @transform_6, window_bounds = array<i64: 1>}, {transform_indices = @transform_7, window_bounds = array<i64: 1, 4, 256>}]} {
    %c0 = arith.constant 0 : index
    %c0_0 = arith.constant 0 : index
    %c0_1 = arith.constant 0 : index
    %0 = vector.load %arg3[%c0, %c0_0, %c0_1] : memref<1x4x256xf32, #tpu.memory_space<vmem>>, vector<1x4x256xf32>
    %1 = vector.shape_cast %0 : vector<1x4x256xf32> to vector<4x256xf32>
    %c0_2 = arith.constant 0 : index
    %c0_3 = arith.constant 0 : index
    %2 = vector.load %arg4[%c0_2, %c0_3] : memref<8x4xf32, #tpu.memory_space<vmem>>, vector<8x4xf32>
    %c0_4 = arith.constant 0 : index
    %c0_5 = arith.constant 0 : index
    %c0_6 = arith.constant 0 : index
    %3 = vector.load %arg2[%c0_4, %c0_5, %c0_6] : memref<1x4x256xf32, #tpu.memory_space<vmem>>, vector<1x4x256xf32>
    %4 = vector.shape_cast %3 : vector<1x4x256xf32> to vector<4x256xf32>
    %cst = arith.constant dense<0.000000e+00> : vector<8x256xf32>
    %5 = tpu.matmul %2, %4, %cst {dimension_numbers = #tpu.dot_dimension_numbers<[1], [0], [0], [1], [0, 0, 1, 1], [], []>} : vector<8x4xf32>, vector<4x256xf32>, vector<8x256xf32> -> vector<8x256xf32>
    %c0_7 = arith.constant 0 : index
    %c0_8 = arith.constant 0 : index
    %6 = vector.load %arg5[%c0_7, %c0_8] : memref<8x4xf32, #tpu.memory_space<vmem>>, vector<8x4xf32>
    %cst_9 = arith.constant dense<0.000000e+00> : vector<8x256xf32>
    %7 = tpu.matmul %6, %1, %cst_9 {dimension_numbers = #tpu.dot_dimension_numbers<[1], [0], [0], [1], [0, 0, 1, 1], [], []>} : vector<8x4xf32>, vector<4x256xf32>, vector<8x256xf32> -> vector<8x256xf32>
    %8 = arith.addf %5, %7 : vector<8x256xf32>
    %c0_10 = arith.constant 0 : index
    %c0_11 = arith.constant 0 : index
    %9 = vector.load %arg6[%c0_10, %c0_11] : memref<8x1xf32, #tpu.memory_space<vmem>>, vector<8x1xf32>
    %10 = vector.broadcast %9 : vector<8x1xf32> to vector<8x256xf32>
    %11 = arith.addf %8, %10 : vector<8x256xf32>
    %cst_12 = arith.constant 0.000000e+00 : f32
    %12 = vector.broadcast %cst_12 : f32 to vector<8x256xf32>
    %13 = arith.maximumf %11, %12 : vector<8x256xf32>
    %c0_13 = arith.constant 0 : index
    %c0_14 = arith.constant 0 : index
    %14 = vector.load %arg7[%c0_13, %c0_14] : memref<8x1xf32, #tpu.memory_space<vmem>>, vector<8x1xf32>
    %15 = vector.broadcast %14 : vector<8x1xf32> to vector<8x256xf32>
    %16 = arith.mulf %13, %15 : vector<8x256xf32>
    %cst_15 = arith.constant dense<0.000000e+00> : vector<256xf32>
    %17 = vector.multi_reduction <add>, %16, %cst_15 [0] : vector<8x256xf32> to vector<256xf32>
    %18 = vector.shape_cast %17 : vector<256xf32> to vector<1x256xf32>
    %c0_16 = arith.constant 0 : index
    %19 = memref.load %arg8[%c0_16] : memref<1xf32, #tpu.memory_space<smem>>
    %20 = vector.broadcast %19 : f32 to vector<1x256xf32>
    %21 = arith.addf %18, %20 : vector<1x256xf32>
    %22 = arith.negf %21 : vector<1x256xf32>
    %23 = math.exp %22 : vector<1x256xf32>
    %cst_17 = arith.constant 1.000000e+00 : f32
    %24 = vector.broadcast %cst_17 : f32 to vector<1x256xf32>
    %25 = arith.addf %24, %23 : vector<1x256xf32>
    %26 = arith.divf %24, %25 : vector<1x256xf32>
    %27 = vector.broadcast %26 : vector<1x256xf32> to vector<4x256xf32>
    %28 = arith.mulf %1, %27 : vector<4x256xf32>
    %c0_18 = arith.constant 0 : index
    %c0_19 = arith.constant 0 : index
    %c0_20 = arith.constant 0 : index
    %29 = vector.load %arg9[%c0_18, %c0_19, %c0_20] : memref<1x4x256xf32, #tpu.memory_space<vmem>>, vector<1x4x256xf32>
    %30 = vector.shape_cast %29 : vector<1x4x256xf32> to vector<4x256xf32>
    %31 = vector.shape_cast %28 : vector<4x256xf32> to vector<1x4x256xf32>
    tpu.vector_store %arg9[%c0_18, %c0_19, %c0_20], %31 {strides = array<i32>} : memref<1x4x256xf32, #tpu.memory_space<vmem>>, vector<1x4x256xf32>,
    return
  }
  func.func @transform_0(%arg0: i32, %arg1: i32) -> (i32, i32, i32) {
    %c0_i32 = arith.constant 0 : i32
    %c0_i32_0 = arith.constant 0 : i32
    return %arg0, %c0_i32, %arg1 : i32, i32, i32
  }
  func.func @transform_1(%arg0: i32, %arg1: i32) -> (i32, i32, i32) {
    %c0_i32 = arith.constant 0 : i32
    %c0_i32_0 = arith.constant 0 : i32
    return %arg0, %c0_i32, %arg1 : i32, i32, i32
  }
  func.func @transform_2(%arg0: i32, %arg1: i32) -> (i32, i32) {
    %c0_i32 = arith.constant 0 : i32
    %c0_i32_0 = arith.constant 0 : i32
    %c0_i32_1 = arith.constant 0 : i32
    return %c0_i32, %c0_i32_0 : i32, i32
  }
  func.func @transform_3(%arg0: i32, %arg1: i32) -> (i32, i32) {
    %c0_i32 = arith.constant 0 : i32
    %c0_i32_0 = arith.constant 0 : i32
    %c0_i32_1 = arith.constant 0 : i32
    return %c0_i32, %c0_i32_0 : i32, i32
  }
  func.func @transform_4(%arg0: i32, %arg1: i32) -> (i32, i32) {
    %c0_i32 = arith.constant 0 : i32
    %c0_i32_0 = arith.constant 0 : i32
    %c0_i32_1 = arith.constant 0 : i32
    return %c0_i32, %c0_i32_0 : i32, i32
  }
  func.func @transform_5(%arg0: i32, %arg1: i32) -> (i32, i32) {
    %c0_i32 = arith.constant 0 : i32
    %c0_i32_0 = arith.constant 0 : i32
    %c0_i32_1 = arith.constant 0 : i32
    return %c0_i32, %c0_i32_0 : i32, i32
  }
  func.func @transform_6(%arg0: i32, %arg1: i32) -> i32 {
    %c0_i32 = arith.constant 0 : i32
    %c0_i32_0 = arith.constant 0 : i32
    return %c0_i32 : i32
  }
  func.func @transform_7(%arg0: i32, %arg1: i32) -> (i32, i32, i32) {
    %c0_i32 = arith.constant 0 : i32
    %c0_i32_0 = arith.constant 0 : i32
    return %arg0, %c0_i32, %arg1 : i32, i32, i32
  }
}

</mosaic_0001>

<bundles_post_ra>
// kernel: _attention_block_impl.1
= control target key start
LH: loop header
LB: loop body
LE: loop exit
PB: predicated region body
PF: predicated region fallthrough
CT: control target
= control target key end

     0   :  { %s810_s26 = smov 0   ;;  %s812_s27 = smov 0   ;;  %s863_s0 = inlined_call_operand.vmem [shape: f32[2,4,256], index: 0, kind: input, shape index: {}]   ;;  %s864_s1 = inlined_call_operand.vmem [shape: f32[2,4,256], index: 1, kind: input, shape index: {}]   ;;  %s865_s2 = inlined_call_operand.vmem [shape: f32[8,4], index: 2, kind: input, shape index: {}]   ;;  %s866_s3 = inlined_call_operand.vmem [shape: f32[8,4], index: 3, kind: input, shape index: {}]   ;;  %s867_s4 = inlined_call_operand.vmem [shape: f32[8,1], index: 4, kind: input, shape index: {}]   ;;  %s868_s5 = inlined_call_operand.vmem [shape: f32[8,1], index: 5, kind: input, shape index: {}]   ;;  %s869_s6 = inlined_call_operand.<no memory space> [shape: f32[1], index: 6, kind: input, shape index: {}]   ;;  %s870_s7 = inlined_call_operand.vmem [shape: f32[2,4,256], index: 7, kind: output, shape index: {}]  }
   0x1   :  { %12 = sst [smem:[#allocation2]] %s869_s6  ;;  %s814_s28 = smov 0  }
   0x2 LB: > { %s30_s6 = sadd.s32 1, %s759_s27  ;;  %p682_p0 = scmp.ge.s32.totalorder %s763_s28, 1  ;;  %s763_s28 = sphi %s814_s28, %s18_s28   ;;  %s759_s27 = sphi %s812_s27, %s872_s27   ;;  %s755_s26 = sphi %s810_s26, %s871_s26  }
   0x3   : > { %p32_p1 = scmp.ge.s32.totalorder %s30_s6, 2  ;;  %p276_p2 = scmp.lt.s32.totalorder %s763_s28, 3 }
   0x5   : > { %s874_s6 = smov (%p32_p1, %s30_s6), 0  ;;  %p277_p3 = pnand %p682_p0, %p276_p2 }
   0x6   : > { %p326_p4 = scmp.lt.s32.totalorder (!%p277_p3), %s755_s26, 1  ;;  %v765_v0 = vmov (!%p277_p3), 0.0   ;;  %v521_v1 = vld [vmem:[%s867_s4] sm:$0xff] (!%p277_p3)  ;;  %v766_v2 = vmov (!%p277_p3), 0   ;;  %vm365_vm0 = vcmask (!%p277_p3), 1043456   ;;  %vm361_vm1 = vcmask (!%p277_p3), 31744  }
   0x7   : > { %280 = sbr.rel (%p277_p3) target bundleno = 289 (0x121), region = 48  ;;  %434 = vmatprep.mubr.f32.mxu1 (!%p277_p3), %v765_v0  ;;  %514 = vmatprep.mubr.f32.mxu0 (!%p277_p3), %v765_v0  ;;  %v531_v3 = vld [vmem:[%s868_s5] sm:$0xff] (!%p277_p3)  ;;  %s551_s21 = sld [smem:[#allocation2]] (!%p277_p3) }
   0x8   : > { %730 = vset.pattern.permute.xlu0 (!%p277_p3), %v766_v2  ;;  %v358_v8 = vld [vmem:[%s866_s3] sm:$0xff] (!%p277_p3) }
   0x9   : > { %524 = vperm.xlu0 (!%p277_p3), %730, %v521_v1   ;;  %v356_v9 = vld [vmem:[%s865_s2] sm:$0xff] (!%p277_p3) }
   0xd   : > { %534 = vperm.xlu0 (!%p277_p3), %730, %v531_v3   ;;  %v552_v33 = vstv (!%p277_p3), %s551_s21 }
   0xe   : > { %s876_s26 = smov (!%p326_p4, %s755_s26), 1 }
   0xf   : > { %s831_s8 = sshll.u32 %s876_s26, 3 }
  0x10   : > { %s343_s13 = scalar_lea.vmem %s864_s1, %s831_s8  ;;  %s333_s16 = scalar_lea.vmem %s863_s0, %s831_s8 }
  0x11   : > { %v355_v4 = vld [vmem:[%s343_s13] sm:$0xff]  ;;  %s353_s24 = scalar_lea.vmem %s870_s7, %s831_s8 }
  0x12   : > { %v360_v5 = vcombine.high %v355_v4, %v355_v4  ;;  %v357_v6 = vld [vmem:[%s333_s16] sm:$0xff] }
  0x13   : > { %v442_v7 = vcombine.high %v357_v6, %v357_v6 }
  0x14   : > { %689 = vmatprep.subr.msk.mxu1 %vm365_vm0, %v360_v5 }
  0x15   : > { %692 = vmatprep.subr.msk.mxu0 %vm365_vm0, %v442_v7  ;;  %690 = vmatpush1.msk.msra.mxu1 %vm365_vm0, %v355_v4 }
  0x16   : > { %693 = vmatpush1.msk.msra.mxu0 %vm365_vm0, %v357_v6  ;;  %691 = vmatmul.mubr.msk.f32.vlgmr.msra.gmra.mrb[0].mxu1 %vm361_vm1, %v358_v8 }
  0x17   : > { %694 = vmatmul.mubr.msk.f32.vlgmr.msra.gmra.mrb[0].mxu0 %vm361_vm1, %v356_v9 }
  0x88   : > { %v525_v10 = vpop.permute.xlu0 %524 }
  0x8c   : > { %v535_v20 = vpop.permute.xlu0 %534 }
  0xe9   : > { %v436_v11 = vpop.f32.mrb[0].mxu1 }
  0xea   : > { %v516_v12 = vpop.f32.mrb[0].mxu0  ;;  %v438_v13 = vpop.f32.mrb[1].mxu1 }
  0xeb   : > { %v517_v14 = vadd.f32 %v516_v12, %v436_v11  ;;  %v518_v15 = vpop.f32.mrb[1].mxu0 }
  0xec   : > { %v519_v16 = vadd.f32 %v518_v15, %v438_v13 }
  0xed   : > { %v527_v17 = vadd.f32 %v525_v10, %v517_v14 }
  0xee   : > { %v528_v18 = vadd.f32 %v525_v10, %v519_v16 }
  0xef   : > { %v529_v19 = vmax.f32 %v527_v17, 0.0 }
  0xf0   : > { %v530_v21 = vmax.f32 %v528_v18, 0.0 }
  0xf1   : > { %v537_v22 = vmul.f32 %v535_v20, %v529_v19 }
  0xf2   : > { %v538_v23 = vmul.f32 %v535_v20, %v530_v21 }
  0xf3   : > { %v539_v24 = vrot.slane %v537_v22, 4 }
  0xf4   : > { %v545_v25 = vrot.slane %v538_v23, 4 }
  0xf5   : > { %v540_v26 = vadd.f32 %v539_v24, %v537_v22 }
  0xf6   : > { %v546_v27 = vadd.f32 %v545_v25, %v538_v23 }
  0xf7   : > { %v541_v28 = vrot.slane %v540_v26, 2 }
  0xf8   : > { %v547_v29 = vrot.slane %v546_v27, 2 }
  0xf9   : > { %v542_v30 = vadd.f32 %v541_v28, %v540_v26 }
  0xfa   : > { %v548_v31 = vadd.f32 %v547_v29, %v546_v27 }
  0xfb   : > { %v543_v32 = vrot.slane %v542_v30, 1 }
  0xfc   : > { %v549_v34 = vrot.slane %v548_v31, 1 }
  0xfd   : > { %v544_v35 = vadd.f32 %v543_v32, %v542_v30 }
  0xfe   : > { %v550_v36 = vadd.f32 %v549_v34, %v548_v31 }
  0xff   : > { %v553_v37 = vadd.f32 %v552_v33, %v544_v35 }
 0x100   : > { %v554_v38 = vadd.f32 %v552_v33, %v550_v36 }
 0x101   : > { %v695_v39 = vmul.f32 -1.442695, %v553_v37 }
 0x102   : > { %v696_v40 = vmul.f32 -1.442695, %v554_v38 }
 0x103   : > { %733 = vpow2.f32 %v695_v39 }
 0x104   : > { %735 = vpow2.f32 %v696_v40 }
 0x10d   : > { %v734_v41 = vpop.eup %733 }
 0x10e   : > { %v736_v42 = vpop.eup %735  ;;  %v561_v43 = vadd.f32 1.0, %v734_v41 }
 0x10f   : > { %v562_v44 = vadd.f32 1.0, %v736_v42 }
 0x110   : > { %737 = vrcp.f32 %v561_v43 }
 0x111   : > { %739 = vrcp.f32 %v562_v44 }
 0x11a   : > { %v738_v45 = vpop.eup %737 }
 0x11b   : > { %v740_v46 = vpop.eup %739 }
 0x11c   : > { %v569_v47 = vcombine.low %v738_v45, %v740_v46 }
 0x11e   : > { %v571_v48 = vmul.f32 %v569_v47, %v355_v4 }
 0x120   : > { %572 = vst [vmem:[%s353_s24] sm:$0xff] %v571_v48 }
 0x121 PF: > { %s18_s28 = sadd.s32 1, %s763_s28   ;;  %s871_s26 = smov %s759_s27 }
 0x122   : > { %p15_p5 = scmp.ge.s32.totalorder %s18_s28, 4   ;;  %s872_s27 = smov %s874_s6 }
 0x124   :  { %17 = sbr.rel (!%p15_p5) target bundleno = 2 (0x2), region = 81 }

// kernel: _attention_block_impl.1
= control target key start
LH: loop header
LB: loop body
LE: loop exit
PB: predicated region body
PF: predicated region fallthrough
CT: control target
= control target key end

     0   :  { %s810_s26 = smov 0   ;;  %s812_s27 = smov 0   ;;  %s863_s0 = inlined_call_operand.vmem [shape: f32[2,4,256], index: 0, kind: input, shape index: {}]   ;;  %s864_s1 = inlined_call_operand.vmem [shape: f32[2,4,256], index: 1, kind: input, shape index: {}]   ;;  %s865_s2 = inlined_call_operand.vmem [shape: f32[8,4], index: 2, kind: input, shape index: {}]   ;;  %s866_s3 = inlined_call_operand.vmem [shape: f32[8,4], index: 3, kind: input, shape index: {}]   ;;  %s867_s4 = inlined_call_operand.vmem [shape: f32[8,1], index: 4, kind: input, shape index: {}]   ;;  %s868_s5 = inlined_call_operand.vmem [shape: f32[8,1], index: 5, kind: input, shape index: {}]   ;;  %s869_s6 = inlined_call_operand.<no memory space> [shape: f32[1], index: 6, kind: input, shape index: {}]   ;;  %s870_s7 = inlined_call_operand.vmem [shape: f32[2,4,256], index: 7, kind: output, shape index: {}]  }
   0x1   :  { %12 = sst [smem:[#allocation2]] %s869_s6  ;;  %s814_s28 = smov 0  }
   0x2 LB: > { %s30_s6 = sadd.s32 1, %s759_s27  ;;  %p682_p0 = scmp.ge.s32.totalorder %s763_s28, 1  ;;  %s763_s28 = sphi %s814_s28, %s18_s28   ;;  %s759_s27 = sphi %s812_s27, %s872_s27   ;;  %s755_s26 = sphi %s810_s26, %s871_s26  }
   0x3   : > { %p32_p1 = scmp.ge.s32.totalorder %s30_s6, 2  ;;  %p276_p2 = scmp.lt.s32.totalorder %s763_s28, 3 }
   0x5   : > { %s874_s6 = smov (%p32_p1, %s30_s6), 0  ;;  %p277_p3 = pnand %p682_p0, %p276_p2 }
   0x6   : > { %p326_p4 = scmp.lt.s32.totalorder (!%p277_p3), %s755_s26, 1  ;;  %v765_v0 = vmov (!%p277_p3), 0.0   ;;  %v521_v1 = vld [vmem:[%s867_s4] sm:$0xff] (!%p277_p3)  ;;  %v766_v2 = vmov (!%p277_p3), 0   ;;  %vm365_vm0 = vcmask (!%p277_p3), 1043456   ;;  %vm361_vm1 = vcmask (!%p277_p3), 31744  }
   0x7   : > { %280 = sbr.rel (%p277_p3) target bundleno = 289 (0x121), region = 48  ;;  %434 = vmatprep.mubr.f32.mxu1 (!%p277_p3), %v765_v0  ;;  %514 = vmatprep.mubr.f32.mxu0 (!%p277_p3), %v765_v0  ;;  %v531_v3 = vld [vmem:[%s868_s5] sm:$0xff] (!%p277_p3)  ;;  %s551_s21 = sld [smem:[#allocation2]] (!%p277_p3) }
   0x8   : > { %730 = vset.pattern.permute.xlu0 (!%p277_p3), %v766_v2  ;;  %v358_v8 = vld [vmem:[%s866_s3] sm:$0xff] (!%p277_p3) }
   0x9   : > { %524 = vperm.xlu0 (!%p277_p3), %730, %v521_v1   ;;  %v356_v9 = vld [vmem:[%s865_s2] sm:$0xff] (!%p277_p3) }
   0xd   : > { %534 = vperm.xlu0 (!%p277_p3), %730, %v531_v3   ;;  %v552_v33 = vstv (!%p277_p3), %s551_s21 }
   0xe   : > { %s876_s26 = smov (!%p326_p4, %s755_s26), 1 }
   0xf   : > { %s831_s8 = sshll.u32 %s876_s26, 3 }
  0x10   : > { %s343_s13 = scalar_lea.vmem %s864_s1, %s831_s8  ;;  %s333_s16 = scalar_lea.vmem %s863_s0, %s831_s8 }
  0x11   : > { %v355_v4 = vld [vmem:[%s343_s13] sm:$0xff]  ;;  %s353_s24 = scalar_lea.vmem %s870_s7, %s831_s8 }
  0x12   : > { %v360_v5 = vcombine.high %v355_v4, %v355_v4  ;;  %v357_v6 = vld [vmem:[%s333_s16] sm:$0xff] }
  0x13   : > { %v442_v7 = vcombine.high %v357_v6, %v357_v6 }
  0x14   : > { %689 = vmatprep.subr.msk.mxu1 %vm365_vm0, %v360_v5 }
  0x15   : > { %692 = vmatprep.subr.msk.mxu0 %vm365_vm0, %v442_v7  ;;  %690 = vmatpush1.msk.msra.mxu1 %vm365_vm0, %v355_v4 }
  0x16   : > { %693 = vmatpush1.msk.msra.mxu0 %vm365_vm0, %v357_v6  ;;  %691 = vmatmul.mubr.msk.f32.vlgmr.msra.gmra.mrb[0].mxu1 %vm361_vm1, %v358_v8 }
  0x17   : > { %694 = vmatmul.mubr.msk.f32.vlgmr.msra.gmra.mrb[0].mxu0 %vm361_vm1, %v356_v9 }
  0x88   : > { %v525_v10 = vpop.permute.xlu0 %524 }
  0x8c   : > { %v535_v20 = vpop.permute.xlu0 %534 }
  0xe9   : > { %v436_v11 = vpop.f32.mrb[0].mxu1 }
  0xea   : > { %v516_v12 = vpop.f32.mrb[0].mxu0  ;;  %v438_v13 = vpop.f32.mrb[1].mxu1 }
  0xeb   : > { %v517_v14 = vadd.f32 %v516_v12, %v436_v11  ;;  %v518_v15 = vpop.f32.mrb[1].mxu0 }
  0xec   : > { %v519_v16 = vadd.f32 %v518_v15, %v438_v13 }
  0xed   : > { %v527_v17 = vadd.f32 %v525_v10, %v517_v14 }
  0xee   : > { %v528_v18 = vadd.f32 %v525_v10, %v519_v16 }
  0xef   : > { %v529_v19 = vmax.f32 %v527_v17, 0.0 }
  0xf0   : > { %v530_v21 = vmax.f32 %v528_v18, 0.0 }
  0xf1   : > { %v537_v22 = vmul.f32 %v535_v20, %v529_v19 }
  0xf2   : > { %v538_v23 = vmul.f32 %v535_v20, %v530_v21 }
  0xf3   : > { %v539_v24 = vrot.slane %v537_v22, 4 }
  0xf4   : > { %v545_v25 = vrot.slane %v538_v23, 4 }
  0xf5   : > { %v540_v26 = vadd.f32 %v539_v24, %v537_v22 }
  0xf6   : > { %v546_v27 = vadd.f32 %v545_v25, %v538_v23 }
  0xf7   : > { %v541_v28 = vrot.slane %v540_v26, 2 }
  0xf8   : > { %v547_v29 = vrot.slane %v546_v27, 2 }
  0xf9   : > { %v542_v30 = vadd.f32 %v541_v28, %v540_v26 }
  0xfa   : > { %v548_v31 = vadd.f32 %v547_v29, %v546_v27 }
  0xfb   : > { %v543_v32 = vrot.slane %v542_v30, 1 }
  0xfc   : > { %v549_v34 = vrot.slane %v548_v31, 1 }
  0xfd   : > { %v544_v35 = vadd.f32 %v543_v32, %v542_v30 }
  0xfe   : > { %v550_v36 = vadd.f32 %v549_v34, %v548_v31 }
  0xff   : > { %v553_v37 = vadd.f32 %v552_v33, %v544_v35 }
 0x100   : > { %v554_v38 = vadd.f32 %v552_v33, %v550_v36 }
 0x101   : > { %v695_v39 = vmul.f32 -1.442695, %v553_v37 }
 0x102   : > { %v696_v40 = vmul.f32 -1.442695, %v554_v38 }
 0x103   : > { %733 = vpow2.f32 %v695_v39 }
 0x104   : > { %735 = vpow2.f32 %v696_v40 }
 0x10d   : > { %v734_v41 = vpop.eup %733 }
 0x10e   : > { %v736_v42 = vpop.eup %735  ;;  %v561_v43 = vadd.f32 1.0, %v734_v41 }
 0x10f   : > { %v562_v44 = vadd.f32 1.0, %v736_v42 }
 0x110   : > { %737 = vrcp.f32 %v561_v43 }
 0x111   : > { %739 = vrcp.f32 %v562_v44 }
 0x11a   : > { %v738_v45 = vpop.eup %737 }
 0x11b   : > { %v740_v46 = vpop.eup %739 }
 0x11c   : > { %v569_v47 = vcombine.low %v738_v45, %v740_v46 }
 0x11e   : > { %v571_v48 = vmul.f32 %v569_v47, %v355_v4 }
 0x120   : > { %572 = vst [vmem:[%s353_s24] sm:$0xff] %v571_v48 }
 0x121 PF: > { %s18_s28 = sadd.s32 1, %s763_s28   ;;  %s871_s26 = smov %s759_s27 }
 0x122   : > { %p15_p5 = scmp.ge.s32.totalorder %s18_s28, 4   ;;  %s872_s27 = smov %s874_s6 }
 0x124   :  { %17 = sbr.rel (!%p15_p5) target bundleno = 2 (0x2), region = 81 }

</bundles_post_ra>
